<compile_context>
chip_gen: v5e
topology: v5e:2x2
jax: 0.10.0
libtpu: 0.0.40
codegen_flags: <defaults>
</compile_context>

<pallas_src>
import jax
import jax.numpy as jnp
from jax.experimental import pallas as pl
from jax.experimental.pallas import tpu as pltpu


def _round_up(x, m):
    return (x + m - 1) // m * m


def _attention_kernel(tgt_ref, keyt_ref, val_ref, wctx_ref, attn_ref):
    # Per-(batch, q-tile) block, computed in (sourceL, TQ) layout.
    tgt = tgt_ref[0]     # (idf, TQ)       streamed per q-tile (already matmul dtype)
    keyt = keyt_ref[0]   # (sourceL, idf)  VMEM-resident across q-tiles
    val = val_ref[0]     # (vdf, sourceL)  VMEM-resident across q-tiles

    # scores in (sourceL, TQ): equivalent to (target^T @ key)^T, no transposes.
    scores = jnp.dot(keyt, tgt, preferred_element_type=jnp.float32)  # (S, TQ)

    # Numerically-stable softmax over sourceL (axis 0); lane axis stays dense.
    m = jnp.max(scores, axis=0, keepdims=True)            # (1, TQ)
    e = jnp.exp(scores - m)                               # (S, TQ)
    denom = jnp.sum(e, axis=0, keepdims=True)             # (1, TQ)
    inv = pl.reciprocal(denom, approx=True)               # EUP slot (~free)
    inv = inv * (2.0 - denom * inv)                       # one Newton step
    attn_t = e * inv                                      # (S, TQ), f32

    # weightedContext = content_value @ attn^T : (vdf, TQ).
    # Tiny-K matmul deliberately left on the MXU (kernel is HBM-bound).
    wctx = jnp.dot(val, attn_t.astype(val.dtype),
                   preferred_element_type=jnp.float32)

    wctx_ref[0] = wctx.astype(wctx_ref.dtype)
    attn_ref[0] = attn_t.astype(attn_ref.dtype)


def global_attention_general(inp, context_key, content_value, *,
                             tq=2048, matmul_dtype=jnp.bfloat16,
                             out_dtype=None):
    """
    inp           : (B, idf, ih, iw)
    context_key   : (B, idf, sourceL)
    content_value : (B, vdf, sourceL)
    returns (weightedContext (B, vdf, ih, iw), attn (B, sourceL, ih, iw))
    """
    B, idf, ih, iw = inp.shape
    queryL = ih * iw
    sourceL = context_key.shape[2]
    vdf = content_value.shape[1]

    out_dtype = inp.dtype if out_dtype is None else out_dtype
    stream_dtype = inp.dtype if matmul_dtype is None else jnp.dtype(matmul_dtype)

    # Wrapper-side glue: flatten spatial dims, pre-transpose the small key
    # tensor, and cast streamed operands to the matmul dtype BEFORE the
    # pallas_call (halves DMA bytes of the dominant idf x TQ stream for bf16).
    target = inp.reshape(B, idf, queryL).astype(stream_dtype)
    keyT = jnp.transpose(context_key, (0, 2, 1)).astype(stream_dtype)
    value = content_value.astype(stream_dtype)

    s_bytes = jnp.dtype(stream_dtype).itemsize
    o_bytes = jnp.dtype(out_dtype).itemsize

    # ---- VMEM budget from block shapes (v7x: only 64 MiB per TensorCore) ----
    try:
        vmem_cap = int(pltpu.get_tpu_info().vmem_capacity_bytes)
    except Exception:
        vmem_cap = 64 * 1024 * 1024          # conservative: v7x per-TC capacity
    vmem_budget = int(vmem_cap * 0.6)        # leave headroom for Mosaic scratch

    # Per-query-column bytes of double-buffered streamed blocks + resident K/V.
    per_q = 2 * (idf * s_bytes + vdf * o_bytes + sourceL * o_bytes)
    fixed = 2 * (sourceL * idf + vdf * sourceL) * s_bytes

    # ---- Query-tile selection ------------------------------------------------
    # TQ: multiple of 128, exactly divides round_up(queryL,128) (no over-pad),
    # <= tq, and fits the VMEM budget.
    q128 = _round_up(queryL, 128)
    divisors = [d for d in range(128, q128 + 1, 128) if q128 % d == 0]
    fitting = [d for d in divisors
               if d <= tq and d * per_q + fixed <= vmem_budget]
    TQ = max(fitting) if fitting else 128
    n_q = q128 // TQ
    # v7x has 2 TensorCores: make sure the "parallel" grid has >= 2 steps.
    if B * n_q < 2:
        smaller = [d for d in divisors if d < TQ]
        if smaller:
            TQ = max(smaller)
            n_q = q128 // TQ

    qpad = q128
    if qpad != queryL:
        target = jnp.pad(target, ((0, 0), (0, 0), (0, qpad - queryL)))

    vmem_estimate = TQ * per_q + fixed
    vmem_limit = min(max(int(vmem_estimate * 1.5) + (4 << 20), 32 << 20),
                     int(vmem_cap * 0.75))

    grid_spec = pltpu.PrefetchScalarGridSpec(
        num_scalar_prefetch=0,
        grid=(B, n_q),
        in_specs=[
            # streamed query tile
            pl.BlockSpec((1, idf, TQ), lambda b, q: (b, 0, q)),
            # key / value stay on the same block for every q (VMEM resident)
            pl.BlockSpec((1, sourceL, idf), lambda b, q: (b, 0, 0)),
            pl.BlockSpec((1, vdf, sourceL), lambda b, q: (b, 0, 0)),
        ],
        out_specs=[
            pl.BlockSpec((1, vdf, TQ), lambda b, q: (b, 0, q)),
            pl.BlockSpec((1, sourceL, TQ), lambda b, q: (b, 0, q)),
        ],
    )

    cost = pl.CostEstimate(
        flops=2 * B * qpad * sourceL * (idf + vdf),
        transcendentals=B * qpad * sourceL,
        bytes_accessed=(B * (idf * qpad + sourceL * idf + vdf * sourceL) * s_bytes
                        + B * (vdf + sourceL) * qpad * o_bytes),
    )

    wctx, attn_t = pl.pallas_call(
        _attention_kernel,
        out_shape=(
            jax.ShapeDtypeStruct((B, vdf, qpad), out_dtype),
            jax.ShapeDtypeStruct((B, sourceL, qpad), out_dtype),
        ),
        grid_spec=grid_spec,
        compiler_params=pltpu.CompilerParams(
            dimension_semantics=("parallel", "parallel"),
            vmem_limit_bytes=vmem_limit,
        ),
        cost_estimate=cost,
    )(target, keyT, value)

    if qpad != queryL:
        wctx = wctx[:, :, :queryL]
        attn_t = attn_t[:, :, :queryL]

    weightedContext = wctx.reshape(B, vdf, ih, iw)
    attn_out = attn_t.reshape(B, sourceL, ih, iw)
    return weightedContext, attn_out


def _reference(inp, context_key, content_value):
    B, idf, ih, iw = inp.shape
    queryL = ih * iw
    target = inp.reshape(B, idf, queryL)
    targetT = jnp.transpose(target, (0, 2, 1))                 # (B, Q, idf)
    attn = jnp.einsum("bqc,bcs->bqs", targetT, context_key)    # (B, Q, S)
    attn = jax.nn.softmax(attn, axis=-1)
    attn_t = jnp.transpose(attn, (0, 2, 1))                    # (B, S, Q)
    wctx = jnp.einsum("bvs,bsq->bvq", content_value, attn_t)   # (B, V, Q)
    return wctx.reshape(B, -1, ih, iw), attn_t.reshape(B, -1, ih, iw)


if __name__ == "__main__":
    key = jax.random.PRNGKey(0)
    B, idf, ih, iw = 2, 4, 16, 16
    sourceL = 8
    vdf = 4

    k1, k2, k3 = jax.random.split(key, 3)
    inp = jax.random.normal(k1, (B, idf, ih, iw), dtype=jnp.float32)
    context_key = jax.random.normal(k2, (B, idf, sourceL), dtype=jnp.float32)
    content_value = jax.random.normal(k3, (B, vdf, sourceL), dtype=jnp.float32)

    # ---- default (bf16-streaming) path: check against a bf16-cast reference
    wctx, attn = global_attention_general(inp, context_key, content_value)
    jax.block_until_ready((wctx, attn))
    assert wctx.shape == (B, vdf, ih, iw)
    assert attn.shape == (B, sourceL, ih, iw)

    inp_b = inp.astype(jnp.bfloat16).astype(jnp.float32)
    key_b = context_key.astype(jnp.bfloat16).astype(jnp.float32)
    val_b = content_value.astype(jnp.bfloat16).astype(jnp.float32)
    wctx_ref_b, attn_ref_b = _reference(inp_b, key_b, val_b)
    assert jnp.allclose(wctx, wctx_ref_b, atol=5e-2, rtol=5e-2)
    assert jnp.allclose(attn, attn_ref_b, atol=5e-2, rtol=5e-2)

    # ---- f32 path: tight numeric check (tolerance only loosened for the EUP
    #      approx reciprocal + Newton step in the softmax denominator).
    wctx32, attn32 = global_attention_general(
        inp, context_key, content_value, matmul_dtype=None)
    jax.block_until_ready((wctx32, attn32))
    wctx_ref, attn_ref = _reference(inp, context_key, content_value)
    assert jnp.allclose(wctx32, wctx_ref, atol=1e-4, rtol=1e-4)
    assert jnp.allclose(attn32, attn_ref, atol=1e-4, rtol=1e-4)

    print("KERNEL_OK")
</pallas_src>

<mosaic_0001>
module attributes {stable_mosaic.version = 11 : i64} {
  func.func @_attention_kernel(%arg0: i32, %arg1: i32, %arg2: memref<1x4x256xbf16, #tpu.memory_space<vmem>>, %arg3: memref<1x8x4xbf16, #tpu.memory_space<vmem>>, %arg4: memref<1x4x8xbf16, #tpu.memory_space<vmem>>, %arg5: memref<1x4x256xf32, #tpu.memory_space<vmem>>, %arg6: memref<1x8x256xf32, #tpu.memory_space<vmem>>) attributes {dimension_semantics = [#tpu.dimension_semantics<parallel>, #tpu.dimension_semantics<parallel>], iteration_bounds = array<i64: 2, 1>, scalar_prefetch = 0 : i64, scratch_operands = 0 : i64, tpu.core_type = #tpu.core_type<tc>, window_params = [{transform_indices = @transform_0, window_bounds = array<i64: 1, 4, 256>}, {transform_indices = @transform_1, window_bounds = array<i64: 1, 8, 4>}, {transform_indices = @transform_2, window_bounds = array<i64: 1, 4, 8>}, {transform_indices = @transform_3, window_bounds = array<i64: 1, 4, 256>}, {transform_indices = @transform_4, window_bounds = array<i64: 1, 8, 256>}]} {
    %c0 = arith.constant 0 : index
    %c0_0 = arith.constant 0 : index
    %c0_1 = arith.constant 0 : index
    %0 = vector.load %arg2[%c0, %c0_0, %c0_1] : memref<1x4x256xbf16, #tpu.memory_space<vmem>>, vector<1x4x256xbf16>
    %1 = vector.shape_cast %0 : vector<1x4x256xbf16> to vector<4x256xbf16>
    %c0_2 = arith.constant 0 : index
    %c0_3 = arith.constant 0 : index
    %c0_4 = arith.constant 0 : index
    %2 = vector.load %arg3[%c0_2, %c0_3, %c0_4] : memref<1x8x4xbf16, #tpu.memory_space<vmem>>, vector<1x8x4xbf16>
    %3 = vector.shape_cast %2 : vector<1x8x4xbf16> to vector<8x4xbf16>
    %c0_5 = arith.constant 0 : index
    %c0_6 = arith.constant 0 : index
    %c0_7 = arith.constant 0 : index
    %4 = vector.load %arg4[%c0_5, %c0_6, %c0_7] : memref<1x4x8xbf16, #tpu.memory_space<vmem>>, vector<1x4x8xbf16>
    %5 = vector.shape_cast %4 : vector<1x4x8xbf16> to vector<4x8xbf16>
    %cst = arith.constant dense<0.000000e+00> : vector<8x256xf32>
    %6 = tpu.matmul %3, %1, %cst {dimension_numbers = #tpu.dot_dimension_numbers<[1], [0], [0], [1], [0, 0, 1, 1], [], []>} : vector<8x4xbf16>, vector<4x256xbf16>, vector<8x256xf32> -> vector<8x256xf32>
    %cst_8 = arith.constant dense<0xFF800000> : vector<256xf32>
    %7 = vector.multi_reduction <maximumf>, %6, %cst_8 [0] : vector<8x256xf32> to vector<256xf32>
    %8 = vector.shape_cast %7 : vector<256xf32> to vector<1x256xf32>
    %9 = vector.broadcast %8 : vector<1x256xf32> to vector<8x256xf32>
    %10 = arith.subf %6, %9 : vector<8x256xf32>
    %11 = math.exp %10 : vector<8x256xf32>
    %cst_9 = arith.constant dense<0.000000e+00> : vector<256xf32>
    %12 = vector.multi_reduction <add>, %11, %cst_9 [0] : vector<8x256xf32> to vector<256xf32>
    %13 = vector.shape_cast %12 : vector<256xf32> to vector<1x256xf32>
    %14 = tpu.reciprocal %13 {approx = true} : vector<1x256xf32> -> vector<1x256xf32>
    %15 = arith.mulf %13, %14 : vector<1x256xf32>
    %cst_10 = arith.constant 2.000000e+00 : f32
    %16 = vector.broadcast %cst_10 : f32 to vector<1x256xf32>
    %17 = arith.subf %16, %15 : vector<1x256xf32>
    %18 = arith.mulf %14, %17 : vector<1x256xf32>
    %19 = vector.broadcast %18 : vector<1x256xf32> to vector<8x256xf32>
    %20 = arith.mulf %11, %19 : vector<8x256xf32>
    %21 = arith.truncf %20 : vector<8x256xf32> to vector<8x256xbf16>
    %cst_11 = arith.constant dense<0.000000e+00> : vector<4x256xf32>
    %22 = tpu.matmul %5, %21, %cst_11 {dimension_numbers = #tpu.dot_dimension_numbers<[1], [0], [0], [1], [0, 0, 1, 1], [], []>} : vector<4x8xbf16>, vector<8x256xbf16>, vector<4x256xf32> -> vector<4x256xf32>
    %c0_12 = arith.constant 0 : index
    %c0_13 = arith.constant 0 : index
    %c0_14 = arith.constant 0 : index
    %23 = vector.load %arg5[%c0_12, %c0_13, %c0_14] : memref<1x4x256xf32, #tpu.memory_space<vmem>>, vector<1x4x256xf32>
    %24 = vector.shape_cast %23 : vector<1x4x256xf32> to vector<4x256xf32>
    %25 = vector.shape_cast %22 : vector<4x256xf32> to vector<1x4x256xf32>
    tpu.vector_store %arg5[%c0_12, %c0_13, %c0_14], %25 {strides = array<i32>} : memref<1x4x256xf32, #tpu.memory_space<vmem>>, vector<1x4x256xf32>,
    %c0_15 = arith.constant 0 : index
    %c0_16 = arith.constant 0 : index
    %c0_17 = arith.constant 0 : index
    %26 = vector.load %arg6[%c0_15, %c0_16, %c0_17] : memref<1x8x256xf32, #tpu.memory_space<vmem>>, vector<1x8x256xf32>
    %27 = vector.shape_cast %26 : vector<1x8x256xf32> to vector<8x256xf32>
    %28 = vector.shape_cast %20 : vector<8x256xf32> to vector<1x8x256xf32>
    tpu.vector_store %arg6[%c0_15, %c0_16, %c0_17], %28 {strides = array<i32>} : memref<1x8x256xf32, #tpu.memory_space<vmem>>, vector<1x8x256xf32>,
    return
  }
  func.func @transform_0(%arg0: i32, %arg1: i32) -> (i32, i32, i32) {
    %c0_i32 = arith.constant 0 : i32
    %c0_i32_0 = arith.constant 0 : i32
    return %arg0, %c0_i32, %arg1 : i32, i32, i32
  }
  func.func @transform_1(%arg0: i32, %arg1: i32) -> (i32, i32, i32) {
    %c0_i32 = arith.constant 0 : i32
    %c0_i32_0 = arith.constant 0 : i32
    %c0_i32_1 = arith.constant 0 : i32
    return %arg0, %c0_i32, %c0_i32_0 : i32, i32, i32
  }
  func.func @transform_2(%arg0: i32, %arg1: i32) -> (i32, i32, i32) {
    %c0_i32 = arith.constant 0 : i32
    %c0_i32_0 = arith.constant 0 : i32
    %c0_i32_1 = arith.constant 0 : i32
    return %arg0, %c0_i32, %c0_i32_0 : i32, i32, i32
  }
  func.func @transform_3(%arg0: i32, %arg1: i32) -> (i32, i32, i32) {
    %c0_i32 = arith.constant 0 : i32
    %c0_i32_0 = arith.constant 0 : i32
    return %arg0, %c0_i32, %arg1 : i32, i32, i32
  }
  func.func @transform_4(%arg0: i32, %arg1: i32) -> (i32, i32, i32) {
    %c0_i32 = arith.constant 0 : i32
    %c0_i32_0 = arith.constant 0 : i32
    return %arg0, %c0_i32, %arg1 : i32, i32, i32
  }
}

</mosaic_0001>

<bundles_post_ra>
// kernel: tpu_custom_call.1
= control target key start
LH: loop header
LB: loop body
LE: loop exit
PB: predicated region body
PF: predicated region fallthrough
CT: control target
= control target key end

     0   :  { %10 = vsyncpa [#allocation3], 0  ;;  %s943_s0 = inlined_call_operand.vmem [shape: bf16[2,4,256], index: 0, kind: input, shape index: {}]   ;;  %s944_s1 = inlined_call_operand.vmem [shape: bf16[2,8,4], index: 1, kind: input, shape index: {}]   ;;  %s945_s2 = inlined_call_operand.vmem [shape: bf16[2,4,8], index: 2, kind: input, shape index: {}]   ;;  %s946_s3 = inlined_call_operand.hbm [shape: f32[2,4,256], index: 3, kind: output, shape index: {0}]   ;;  %s947_s4 = inlined_call_operand.hbm [shape: f32[2,8,256], index: 4, kind: output, shape index: {1}]  }
   0x1   :  { %12 = vsyncpa [#allocation3 + $0x1], 0 }
   0x2   :  { %13 = vsyncpa [#allocation5], 0 }
   0x3   :  { %15 = vsyncpa [#allocation5 + $0x1], 0  ;;  %s813_s15 = smov 0   ;;  %s815_s16 = smov 0  }
   0x4   :  { %s817_s17 = smov 0   ;;  %s819_s18 = smov 0  }
   0x5   :  { %s821_s19 = smov 0   ;;  %s823_s20 = smov 0  }
   0x6 LB: > { %s582_s21 = sadd.s32 4294967295, %s786_s20   ;;  %s583_s22 = sadd.s32 4294967294, %s786_s20   ;;  %s786_s20 = sphi %s823_s20, %s21_s20   ;;  %s782_s19 = sphi %s821_s19, %s954_s19   ;;  %s778_s18 = sphi %s819_s18, %s953_s18   ;;  %s774_s17 = sphi %s817_s17, %s952_s17   ;;  %s770_s16 = sphi %s815_s16, %s951_s16   ;;  %s766_s15 = sphi %s813_s15, %s950_s15  }
   0x7   : > { %s33_s23 = sadd.s32 1, %s782_s19  ;;  %s122_s24 = sadd.s32 1, %s774_s17 }
   0x8   : > { %p35_p0 = scmp.ge.s32.totalorder %s33_s23, 2  ;;  %p132_p1 = scmp.ne.s32.totalorder %s774_s17, %s770_s16 }
   0x9   : > { %p133_p2 = scmp.eq.s32.totalorder %s582_s21, 1  ;;  %p138_p3 = scmp.ne.s32.totalorder %s770_s16, %s766_s15 }
   0xa   : > { %s956_s23 = smov (%p35_p0, %s33_s23), 0  ;;  %p139_p5 = scmp.eq.s32.totalorder %s583_s22, 1 }
   0xb   : > { %p853_p4 = por %p133_p2, %p132_p1  ;;  %s117_s26 = ssub.s32 %s782_s19, %s956_s23 }
   0xc   : > { %p586_p6 = scmp.ge.s32.totalorder %s786_s20, 1  ;;  %p120_p7 = scmp.eq.s32.totalorder %s117_s26, 0 }
   0xd   : > { %p860_p8 = por %p139_p5, %p138_p3  ;;  %p212_p9 = scmp.lt.s32.totalorder %s786_s20, 3 }
   0xe   : > { %s866_s28 = scalar_select %p120_p7, %s774_s17, %s122_s24  }
   0xf   : > { %p213_p10 = pnand %p586_p6, %p212_p9 }
  0x10   : > { %p256_p11 = scmp.lt.s32.totalorder (!%p213_p10), %s778_s18, 1  ;;  %s880_s11 = sand.u32 (!%p213_p10), 1, %s770_s16  }
  0x11   : > { %216 = sbr.rel (%p213_p10) target bundleno = 362 (0x16a), region = 32  ;;  %s588_s12 = sshll.u32 (!%p213_p10), %s880_s11, 4 }
  0x12   : > { %s254_s24 = scalar_lea.vmem (!%p213_p10), [#allocation4], %s588_s12  ;;  %s607_s26 = sshll.u32 (!%p213_p10), %s778_s18, 4 }
  0x13   : > { %s441_s5 = scalar_lea.hbm (!%p213_p10), %s947_s4, %s607_s26  ;;  %s443_s6 = sshll.u32 (!%p213_p10), %s254_s24, 4  ;;  %s444_s6 = int_to_ptr.vmem [resolvable:$true] %s443_s6 }
  0x14   : > { %s411_s8 = scalar_lea.sflag (!%p213_p10), [#allocation5], %s880_s11  ;;  %s696_s14 = scalar_lea.hbm (!%p213_p10), %s947_s4, 32 }
  0x16   : > { %s870_s29 = scalar_select %p256_p11, %s778_s18, 1  ;;  %vm287_vm0 = vcmask 1041408   ;;  %vm283_vm1 = vcmask 31744   ;;  %vm364_vm2 = vcmask 1043456   ;;  %vm360_vm3 = vcmask 64512  }
  0x18   : > { %s605_s30 = sshll.u32 %s870_s29, 2  ;;  %s592_s13 = sshll.u32 %s870_s29, 1 }
  0x19   : > { %s263_s7 = scalar_lea.vmem %s943_s0, %s605_s30  ;;  %s268_s10 = scalar_lea.vmem %s944_s1, %s605_s30 }
  0x1a   : > { %v276_v0 = vld [vmem:[%s263_s7] sm:$0xf]  ;;  %s272_s22 = scalar_lea.vmem %s945_s2, %s592_s13  ;;  %s445_s7 = sshll.u32 %s441_s5, 4  ;;  %s446_s7 = int_to_ptr.hbm [resolvable:$true] %s445_s7 }
  0x1b   : > { %280 = vst [vmem:[#allocation1] ss:$4 sm:$0xff] %v276_v0  ;;  %v277_v5 = vld [vmem:[%s268_s10] sm:$0xf]  ;;  %s690_s9 = sshra.s32 %s446_s7, 4  ;;  %s691_s9 = int_to_ptr.hbm [resolvable:$true] %s690_s9 }
  0x1c   : > { %v278_v54 = vld [vmem:[%s272_s22] sm:$0x3]  ;;  %s692_s10 = scalar_lea.hbm %s691_s9, 16  ;;  %p697_p1 = scmp.lt.s32.totalorder %s691_s9, %s947_s4 }
  0x1d   : > { %p693_p12 = scmp.ne.s32.totalorder %s691_s9, %s692_s10  ;;  %p698_p2 = scmp.lt.s32.totalorder %s696_s14, %s692_s10 }
  0x1f   : > { %p694_p13 = pnand %p693_p12, %p853_p4  ;;  %p699_p3 = por %p698_p2, %p697_p1 }
  0x21   : > { %p695_p0 = pneg %p694_p13 }
  0x22   : > { %v281_v1 = vld.sshfl [vmem:[#allocation1] sm:$0xff pattern:$0x73625140]  ;;  %v282_v2 = vld.sshfl [vmem:[#allocation1 + $0x8] sm:$0xff pattern:$0x73625140] }
  0x23   : > { %v288_v3 = vsel %vm287_vm0, %v281_v1, 0  ;;  %v290_v4 = vsel %vm287_vm0, %v282_v2, 0  ;;  %p700_p5 = pnand %p699_p3, %p695_p0 }
  0x24   : > { %299 = vmatpush.bf16.msra.mxu0 %v288_v3  ;;  %312 = vmatpush.bf16.msra.mxu1 %v290_v4 }
  0x27   : > { %593 = vmatmul.msk.bf16.vlgmr.msra.gmra.mxu0 %vm283_vm1, %v277_v5  ;;  %594 = vmatmul.msk.bf16.vlgmr.msra.gmra.mxu1 %vm283_vm1, %v277_v5 }
  0xa4   : > { %v301_v6 = vpop.f32.mrf.mxu0  ;;  %v314_v7 = vpop.f32.mrf.mxu1 }
  0xa5   : > { %v318_v8 = vrot.slane %v301_v6, 4  ;;  %v324_v9 = vrot.slane %v314_v7, 4 }
  0xa7   : > { %v319_v10 = vmax.f32 %v301_v6, %v318_v8  ;;  %v325_v11 = vmax.f32 %v314_v7, %v324_v9 }
  0xa9   : > { %v320_v12 = vrot.slane %v319_v10, 2  ;;  %v326_v13 = vrot.slane %v325_v11, 2 }
  0xab   : > { %v321_v14 = vmax.f32 %v319_v10, %v320_v12  ;;  %v327_v15 = vmax.f32 %v325_v11, %v326_v13 }
  0xac   : > { %v303_v16 = vpop.f32.mrf.mxu0  ;;  %v316_v17 = vpop.f32.mrf.mxu1 }
  0xad   : > { %v322_v18 = vrot.slane %v321_v14, 1  ;;  %v328_v19 = vrot.slane %v327_v15, 1 }
  0xaf   : > { %v323_v20 = vmax.f32 %v321_v14, %v322_v18  ;;  %v329_v21 = vmax.f32 %v327_v15, %v328_v19 }
  0xb1   : > { %v330_v22 = vsub.f32 %v301_v6, %v323_v20  ;;  %v331_v23 = vsub.f32 %v314_v7, %v329_v21 }
  0xb3   : > { %v332_v24 = vmul.f32 1.442695, %v330_v22  ;;  %v334_v25 = vmul.f32 1.442695, %v331_v23 }
  0xb5   : > { %668 = vpow2.f32 %v332_v24 }
  0xb6   : > { %670 = vpow2.f32 %v334_v25 }
  0xbb   : > { %v669_v26 = vpop.eup %668 }
  0xbc   : > { %v671_v27 = vpop.eup %670  ;;  %v336_v28 = vrot.slane %v669_v26, 4 }
  0xbd   : > { %v342_v29 = vrot.slane %v671_v27, 4 }
  0xbe   : > { %v337_v30 = vadd.f32 %v669_v26, %v336_v28 }
  0xbf   : > { %v343_v31 = vadd.f32 %v671_v27, %v342_v29 }
  0xc0   : > { %v338_v32 = vrot.slane %v337_v30, 2 }
  0xc1   : > { %v344_v33 = vrot.slane %v343_v31, 2 }
  0xc2   : > { %v339_v34 = vadd.f32 %v338_v32, %v337_v30 }
  0xc3   : > { %v345_v35 = vadd.f32 %v344_v33, %v343_v31 }
  0xc4   : > { %v340_v36 = vrot.slane %v339_v34, 1 }
  0xc5   : > { %v346_v37 = vrot.slane %v345_v35, 1 }
  0xc6   : > { %v341_v38 = vadd.f32 %v340_v36, %v339_v34 }
  0xc7   : > { %v347_v39 = vadd.f32 %v346_v37, %v345_v35 }
  0xc8   : > { %672 = vrcp.f32 %v341_v38 }
  0xc9   : > { %674 = vrcp.f32 %v347_v39 }
  0xce   : > { %v673_v40 = vpop.eup %672 }
  0xcf   : > { %v675_v41 = vpop.eup %674  ;;  %v350_v42 = vmul.f32 %v673_v40, %v341_v38 }
  0xd0   : > { %v351_v43 = vmul.f32 %v675_v41, %v347_v39 }
  0xd1   : > { %v352_v44 = vsub.f32 2.0, %v350_v42 }
  0xd2   : > { %v353_v45 = vsub.f32 2.0, %v351_v43 }
  0xd3   : > { %v354_v46 = vmul.f32 %v673_v40, %v352_v44 }
  0xd4   : > { %v355_v47 = vmul.f32 %v675_v41, %v353_v45 }
  0xd5   : > { %v356_v48 = vmul.f32 %v669_v26, %v354_v46 }
  0xd6   : > { %v357_v49 = vmul.f32 %v671_v27, %v355_v47 }
  0xd7   : > { %v358_v50 = vpack.c.bf16 %v356_v48, %v356_v48  ;;  %403 = vst [vmem:[%s254_s24] sm:$0xff] %v356_v48 }
  0xd8   : > { %v359_v51 = vpack.c.bf16 %v357_v49, %v357_v49  ;;  %404 = vst [vmem:[%s254_s24 + $0x8] sm:$0xff] %v357_v49 }
  0xd9   : > { %v366_v52 = vsel %vm364_vm2, %v358_v50, 0 }
  0xda   : > { %378 = vmatpush.bf16.msra.mxu2 %v366_v52  ;;  %v369_v53 = vsel %vm364_vm2, %v359_v51, 0 }
  0xdb   : > { %391 = vmatpush.bf16.msra.mxu3 %v369_v53 }
  0xdd   : > { %595 = vmatmul.msk.bf16.vlgmr.msra.gmra.mxu2 %vm360_vm3, %v278_v54 }
  0xde   : > { %596 = vmatmul.msk.bf16.vlgmr.msra.gmra.mxu3 %vm360_vm3, %v278_v54 }
  0xdf   : > { %703 = shalt.err (!%p700_p5)
}
  0xe0   : > { %609 = dma.vmem_to_hbm [thread:$0]  (%p853_p4), %s444_s6, 256, %s446_s7, %s411_s8  }
  0xe1   : > { %s606_s24 = sshll.u32 %s778_s18, 3  ;;  %s587_s26 = sshll.u32 %s880_s11, 3 }
  0xe2   : > { %s424_s5 = scalar_lea.hbm %s946_s3, %s606_s24  ;;  %s247_s12 = scalar_lea.vmem [#allocation2], %s587_s26 }
  0xe3   : > { %s426_s9 = sshll.u32 %s247_s12, 4  ;;  %s428_s10 = sshll.u32 %s424_s5, 4  ;;  %s427_s9 = int_to_ptr.vmem [resolvable:$true] %s426_s9  ;;  %s429_s10 = int_to_ptr.hbm [resolvable:$true] %s428_s10 }
  0xe4   : > { %s406_s13 = scalar_lea.sflag [#allocation3], %s880_s11  ;;  %s718_s6 = sshra.s32 %s429_s10, 4  ;;  %s719_s6 = int_to_ptr.hbm [resolvable:$true] %s718_s6 }
  0xe5   : > { %s720_s18 = scalar_lea.hbm %s719_s6, 8  ;;  %s724_s14 = scalar_lea.hbm %s946_s3, 16 }
  0xe6   : > { %p721_p6 = scmp.ne.s32.totalorder %s719_s6, %s720_s18  ;;  %p725_p10 = scmp.lt.s32.totalorder %s719_s6, %s946_s3 }
  0xe7   : > { %p726_p11 = scmp.lt.s32.totalorder %s724_s14, %s720_s18 }
  0xe8   : > { %p722_p7 = pnand %p721_p6, %p853_p4 }
  0xe9   : > { %p727_p12 = por %p726_p11, %p725_p10 }
  0xea   : > { %p723_p9 = pneg %p722_p7 }
  0xec   : > { %p728_p13 = pnand %p727_p12, %p723_p9 }
 0x160   : > { %v380_v55 = vpop.f32.mrf.mxu2 }
 0x161   : > { %v393_v56 = vpop.f32.mrf.mxu3 }
 0x162   : > { %v399_v57 = vrot.slane %v393_v56, 4 }
 0x164   : > { %v400_v58 = vsel %vm364_vm2, %v380_v55, %v399_v57 }
 0x165   : > { %402 = vst [vmem:[%s247_s12] sm:$0xff] %v400_v58 }
 0x166   : > { %731 = shalt.err (!%p728_p13)
}
 0x167   : > { %608 = dma.vmem_to_hbm [thread:$0]  (%p853_p4), %s427_s9, 128, %s429_s10, %s406_s13  }
 0x168   : > { %v382_v59 = vpop.f32.mrf.mxu2 }
 0x169   : > { %v395_v60 = vpop.f32.mrf.mxu3 }
 0x16a PF: > { %p619_p0 = scmp.ge.s32.totalorder %s786_s20, 2  ;;  %s457_s11 = sand.u32 1, %s766_s15  }
 0x16b   : > { %s458_s24 = scalar_lea.sflag [#allocation3], %s457_s11 }
 0x16c   : > { %p613_p1 = pnand %p619_p0, %p860_p8 }
 0x16e   : > { %p614_p2 = pneg %p613_p1 }
 0x170   : > { %757 = dma.done.wait (%p614_p2), %s458_s24, 128  }
 0x171   : > { %759 = vsyncadd (%p614_p2), %s458_s24, 4294967168  ;;  %s468_s26 = scalar_lea.sflag [#allocation5], %s457_s11 }
 0x172   : > { %761 = dma.done.wait (%p614_p2), %s468_s26, 256  }
 0x173   : > { %763 = vsyncadd (%p614_p2), %s468_s26, 4294967040  ;;  %s21_s20 = sadd.s32 1, %s786_s20   ;;  %s950_s15 = smov %s770_s16 }
 0x174   : > { %p18_p4 = scmp.ge.s32.totalorder %s21_s20, 4   ;;  %s951_s16 = smov %s774_s17 }
 0x175   : > { %s952_s17 = smov %s866_s28  ;;  %s953_s18 = smov %s782_s19 }
 0x176   : > { %s954_s19 = smov %s956_s23  ;;  %20 = sbr.rel (!%p18_p4) target bundleno = 6 (0x6), region = 90 }
 0x17b   :  { %474 = vsyncpa [#allocation3], 1 }
 0x17c   :  { %476 = vsyncpa [#allocation3 + $0x1], 1 }
 0x17d   :  { %477 = vsyncpa [#allocation5], 1 }
 0x17e   :  { %479 = vsyncpa [#allocation5 + $0x1], 1 }

</bundles_post_ra>
